<compile_context>
chip_gen: v5e
topology: v5e:2x2
jax: 0.10.0
libtpu: 0.0.40
codegen_flags: <defaults>
</compile_context>

<pallas_src>
import jax
import jax.numpy as jnp
from jax.experimental import pallas as pl
from jax.experimental.pallas import tpu as pltpu


def _round_up(x, m):
    return ((x + m - 1) // m) * m


def _choose_tile(dim, max_tile, granule):
    """Pick (tile, padded_dim) with minimal padding.

    If the dim fits in one block, use the full (unpadded) dim — the
    (8, 128) layout rule is exempted when block dim == array dim.
    Otherwise split into near-equal blocks rounded to the layout granule.
    """
    if dim <= max_tile:
        return dim, dim
    aligned = _round_up(dim, granule)
    nblocks = -(-aligned // max_tile)                   # ceil
    tile = _round_up(-(-aligned // nblocks), granule)   # ceil, then align
    return tile, tile * nblocks


def _matmul_kernel_noacc(a_ref, b_ref, o_ref):
    # Whole K reduction in one block: one MXU pass per (i, j) output tile,
    # lane-dense store, no accumulator, no pl.when.
    o_ref[...] = jnp.dot(
        a_ref[...], b_ref[...], preferred_element_type=jnp.float32
    ).astype(o_ref.dtype)


def _matmul_kernel_acc_inplace(a_ref, b_ref, o_ref):
    # K-reduction over the last ("arbitrary") grid axis, accumulating directly
    # into the VMEM-resident f32 output block (same (i, j) block across k).
    @pl.when(pl.program_id(2) == 0)
    def _():
        o_ref[...] = jnp.zeros_like(o_ref)

    o_ref[...] += jnp.dot(
        a_ref[...], b_ref[...], preferred_element_type=jnp.float32
    )


def _matmul_kernel_acc_scratch(a_ref, b_ref, o_ref, acc_ref):
    # Fallback for non-f32 outputs: keep an f32 scratch accumulator.
    @pl.when(pl.program_id(2) == 0)
    def _():
        acc_ref[...] = jnp.zeros_like(acc_ref)

    acc_ref[...] += jnp.dot(
        a_ref[...], b_ref[...], preferred_element_type=jnp.float32
    )

    @pl.when(pl.program_id(2) == pl.num_programs(2) - 1)
    def _():
        o_ref[...] = acc_ref[...].astype(o_ref.dtype)


def single_op_model_matmul(a, b, *, tm_max=1024, tn_max=1024, tk_max=512):
    """Pallas equivalent of SingleOpModel(torch.matmul, {}).forward(a, b), 2-D case."""
    assert a.ndim == 2 and b.ndim == 2, "only the 2-D matmul case is implemented"
    M, K = a.shape
    K2, N = b.shape
    assert K == K2, "inner dims must match"
    assert a.dtype == b.dtype, "mixed-dtype promotion not implemented"
    out_dtype = a.dtype

    # Tile selection: minimal padding (layout alignment only, never full-tile).
    tm, Mp = _choose_tile(M, tm_max, 8)      # sublane granule
    tn, Np = _choose_tile(N, tn_max, 128)    # lane granule (dense vst)

    split_k = K > tk_max
    if split_k:
        tk, Kp = _choose_tile(K, tk_max, 128)
    else:
        # Whole K as a single block == full array dim -> exempt, zero padding
        # (e.g. K=64 in the small test stays 64, not padded to 128).
        tk, Kp = K, K

    grid_m, grid_n = Mp // tm, Np // tn

    # Megacore: if the (i, j) grid collapsed to one tile, split N in two when
    # it costs zero padding so v7x's second TensorCore gets work.
    if grid_m * grid_n == 1 and N >= 256 and N % 256 == 0:
        tn = N // 2          # multiple of 128 by construction
        grid_n = 2
        Np = N

    # Zero-pad only the (small) layout remainders; exact for matmul.
    if (Mp, Kp) != (M, K):
        a = jnp.pad(a, ((0, Mp - M), (0, Kp - K)))
    if (Kp, Np) != (K, N):
        b = jnp.pad(b, ((0, Kp - K), (0, Np - N)))

    itemsize = jnp.dtype(out_dtype).itemsize
    # Double-buffered A/B tiles + (possibly double-buffered) output tile.
    est_vmem = 2 * (tm * tk + tk * tn) * itemsize + 2 * tm * tn * 4
    try:
        vmem_cap = int(pltpu.get_tpu_info().vmem_capacity_bytes)
    except Exception:  # pragma: no cover - conservative fallback
        vmem_cap = 64 * 1024 * 1024
    vmem_limit = int(min(max(2 * est_vmem, 32 * 1024 * 1024),
                         vmem_cap - 12 * 1024 * 1024))
    vmem_limit = max(vmem_limit, est_vmem + 4 * 1024 * 1024)

    cost = pl.CostEstimate(
        flops=2 * M * N * K,
        transcendentals=0,
        bytes_accessed=(M * K + K * N + M * N) * itemsize,
    )

    out_shape = jax.ShapeDtypeStruct((Mp, Np), out_dtype)

    if not split_k:
        out = pl.pallas_call(
            _matmul_kernel_noacc,
            out_shape=out_shape,
            grid_spec=pltpu.PrefetchScalarGridSpec(
                num_scalar_prefetch=0,
                grid=(grid_m, grid_n),
                in_specs=[
                    pl.BlockSpec((tm, Kp), lambda i, j: (i, 0)),
                    pl.BlockSpec((Kp, tn), lambda i, j: (0, j)),
                ],
                out_specs=pl.BlockSpec((tm, tn), lambda i, j: (i, j)),
            ),
            compiler_params=pltpu.CompilerParams(
                dimension_semantics=("parallel", "parallel"),
                vmem_limit_bytes=vmem_limit,
            ),
            cost_estimate=cost,
        )(a, b)
    else:
        use_inplace = jnp.dtype(out_dtype) == jnp.dtype(jnp.float32)
        kernel = _matmul_kernel_acc_inplace if use_inplace else _matmul_kernel_acc_scratch
        scratch = [] if use_inplace else [pltpu.VMEM((tm, tn), jnp.float32)]
        out = pl.pallas_call(
            kernel,
            out_shape=out_shape,
            grid_spec=pltpu.PrefetchScalarGridSpec(
                num_scalar_prefetch=0,
                grid=(grid_m, grid_n, Kp // tk),
                in_specs=[
                    pl.BlockSpec((tm, tk), lambda i, j, k: (i, k)),
                    pl.BlockSpec((tk, tn), lambda i, j, k: (k, j)),
                ],
                out_specs=pl.BlockSpec((tm, tn), lambda i, j, k: (i, j)),
                scratch_shapes=scratch,
            ),
            compiler_params=pltpu.CompilerParams(
                dimension_semantics=("parallel", "parallel", "arbitrary"),
                vmem_limit_bytes=vmem_limit,
            ),
            cost_estimate=cost,
        )(a, b)

    if (Mp, Np) != (M, N):
        out = out[:M, :N]
    return out


if __name__ == "__main__":
    key = jax.random.PRNGKey(0)
    ka, kb, kc, kd = jax.random.split(key, 4)

    # 1) Small test shape (SingleOpModel matmul forward):
    #    A: (16, 64), B: (64, 256) — no padding at all, single-K-block path,
    #    N split into two 128-wide tiles (free megacore work on v7x).
    M, K, N = 16, 64, 256
    a = jax.random.normal(ka, (M, K), dtype=jnp.float32)
    b = jax.random.normal(kb, (K, N), dtype=jnp.float32)
    out = jax.block_until_ready(single_op_model_matmul(a, b))
    ref = a @ b
    assert out.shape == (M, N)
    assert jnp.allclose(out, ref, atol=1e-4, rtol=1e-4), "mismatch (small case)"

    # 2) Non-divisible shape exercising the K-split, in-place-accumulate path
    #    (K=1300 now pads to 1536 instead of 2048; M=24 / N=384 not padded).
    M2, K2, N2 = 24, 1300, 384
    a2 = jax.random.normal(kc, (M2, K2), dtype=jnp.float32)
    b2 = jax.random.normal(kd, (K2, N2), dtype=jnp.float32)
    out2 = jax.block_until_ready(single_op_model_matmul(a2, b2))
    ref2 = a2 @ b2
    assert out2.shape == (M2, N2)
    assert jnp.allclose(out2, ref2, atol=1e-3, rtol=1e-3), "mismatch (acc case)"

    print("KERNEL_OK")
</pallas_src>

<mosaic_0001>
module attributes {stable_mosaic.version = 11 : i64} {
  func.func @_matmul_kernel_noacc(%arg0: i32, %arg1: i32, %arg2: memref<16x64xf32, #tpu.memory_space<vmem>>, %arg3: memref<64x128xf32, #tpu.memory_space<vmem>>, %arg4: memref<16x128xf32, #tpu.memory_space<vmem>>) attributes {dimension_semantics = [#tpu.dimension_semantics<parallel>, #tpu.dimension_semantics<parallel>], iteration_bounds = array<i64: 1, 2>, scalar_prefetch = 0 : i64, scratch_operands = 0 : i64, tpu.core_type = #tpu.core_type<tc>, window_params = [{transform_indices = @transform_0, window_bounds = array<i64: 16, 64>}, {transform_indices = @transform_1, window_bounds = array<i64: 64, 128>}, {transform_indices = @transform_2, window_bounds = array<i64: 16, 128>}]} {
    %c0 = arith.constant 0 : index
    %c0_0 = arith.constant 0 : index
    %0 = vector.load %arg2[%c0, %c0_0] : memref<16x64xf32, #tpu.memory_space<vmem>>, vector<16x64xf32>
    %c0_1 = arith.constant 0 : index
    %c0_2 = arith.constant 0 : index
    %1 = vector.load %arg3[%c0_1, %c0_2] : memref<64x128xf32, #tpu.memory_space<vmem>>, vector<64x128xf32>
    %cst = arith.constant dense<0.000000e+00> : vector<16x128xf32>
    %2 = tpu.matmul %0, %1, %cst {dimension_numbers = #tpu.dot_dimension_numbers<[1], [0], [0], [1], [0, 0, 1, 1], [], []>} : vector<16x64xf32>, vector<64x128xf32>, vector<16x128xf32> -> vector<16x128xf32>
    %c0_3 = arith.constant 0 : index
    %c0_4 = arith.constant 0 : index
    %3 = vector.load %arg4[%c0_3, %c0_4] : memref<16x128xf32, #tpu.memory_space<vmem>>, vector<16x128xf32>
    tpu.vector_store %arg4[%c0_3, %c0_4], %2 {strides = array<i32>} : memref<16x128xf32, #tpu.memory_space<vmem>>, vector<16x128xf32>,
    return
  }
  func.func @transform_0(%arg0: i32, %arg1: i32) -> (i32, i32) {
    %c0_i32 = arith.constant 0 : i32
    %c0_i32_0 = arith.constant 0 : i32
    return %arg0, %c0_i32 : i32, i32
  }
  func.func @transform_1(%arg0: i32, %arg1: i32) -> (i32, i32) {
    %c0_i32 = arith.constant 0 : i32
    %c0_i32_0 = arith.constant 0 : i32
    return %c0_i32, %arg1 : i32, i32
  }
  func.func @transform_2(%arg0: i32, %arg1: i32) -> (i32, i32) {
    %c0_i32 = arith.constant 0 : i32
    return %arg0, %arg1 : i32, i32
  }
}

</mosaic_0001>

<bundles_post_ra>
// kernel: tpu_custom_call.1
= control target key start
LH: loop header
LB: loop body
LE: loop exit
PB: predicated region body
PF: predicated region fallthrough
CT: control target
= control target key end

     0   :  { %7 = vsyncpa [#allocation3], 0  ;;  %s790_s0 = inlined_call_operand.hbm [shape: f32[16,64], index: 0, kind: input, shape index: {}]   ;;  %s791_s1 = inlined_call_operand.hbm [shape: f32[64,256], index: 1, kind: input, shape index: {}]   ;;  %s792_s2 = inlined_call_operand.hbm [shape: f32[16,256], index: 2, kind: output, shape index: {}]  }
   0x1   :  { %8 = vsyncpa [#allocation6], 0 }
   0x2   :  { %10 = vsyncpa [#allocation6 + $0x1], 0 }
   0x3   :  { %11 = vsyncpa [#allocation4], 0 }
   0x4   :  { %13 = vsyncpa [#allocation4 + $0x1], 0  ;;  %s635_s9 = smov 0   ;;  %s637_s10 = smov 0  }
   0x5   :  { %s639_s11 = smov 0   ;;  %s641_s12 = smov 0  }
   0x6   :  { %s643_s13 = smov 0   ;;  %s645_s14 = smov 0  }
   0x7 LB: > { %s361_s15 = sadd.s32 4294967295, %s611_s14   ;;  %s362_s16 = sadd.s32 4294967294, %s611_s14   ;;  %s611_s14 = sphi %s645_s14, %s19_s14   ;;  %s607_s13 = sphi %s643_s13, %s806_s13   ;;  %s603_s12 = sphi %s641_s12, %s805_s12   ;;  %s599_s11 = sphi %s639_s11, %s804_s11   ;;  %s595_s10 = sphi %s637_s10, %s803_s10   ;;  %s591_s9 = sphi %s635_s9, %s802_s9  }
   0x8   : > { %p77_p0 = scmp.ne.s32.totalorder %s595_s10, %s591_s9  ;;  %p669_p1 = scmp.eq.s32.totalorder %s361_s15, 0 }
   0x9   : > { %p673_p2 = scmp.eq.s32.totalorder %s361_s15, 1  ;;  %p109_p3 = scmp.eq.s32.totalorder %s362_s16, 1 }
   0xa   : > { %p679_p4 = por %p669_p1, %p77_p0  ;;  %p363_p5 = scmp.ge.s32.totalorder %s611_s14, 1 }
   0xb   : > { %p684_p6 = por %p109_p3, %p77_p0  ;;  %p116_p7 = scmp.lt.s32.totalorder %s611_s14, 3 }
   0xc   : > { %s130_s23 = sshll.u32 %s790_s0, 4  ;;  %s613_s25 = smov [#allocation2]   ;;  %s131_s23 = int_to_ptr.hbm [resolvable:$true] %s130_s23 }
   0xd   : > { %p692_p8 = pnand %p363_p5, %p116_p7  ;;  %s132_s26 = sshll.u32 %s613_s25, 4  ;;  %s133_s26 = int_to_ptr.vmem [resolvable:$true] %s132_s26 }
   0xe   : > { %p365_p11 = scmp.ge.s32.totalorder %s611_s14, 2  ;;  %s793_s27 = smov 128  }
   0xf   : > { %p394_p9 = pneg %p692_p8  ;;  %s615_s28 = smov 8  }
  0x10   : > { %s28_s29 = sadd.s32 1, %s607_s13  ;;  %s64_s30 = sadd.s32 1, %s599_s11 }
  0x11   : > { %p395_p10 = pnand %p394_p9, %p669_p1  ;;  %p29_p12 = scmp.ge.s32.totalorder %s28_s29, 2 }
  0x12   : > { %p71_p13 = scmp.ne.s32.totalorder %s599_s11, %s595_s10  ;;  %p72_p0 = scmp.eq.s32.totalorder %s611_s14, 0 }
  0x13   : > { %397 = dma.hbm_to_vmem [thread:$0]  (!%p395_p10), %s131_s23, 256, %s133_s26, [#allocation3], %s793_s27, %s793_s27, %s615_s28  }
  0x14   : > { %s808_s29 = smov (%p29_p12, %s28_s29), 0  ;;  %p711_p3 = por %p72_p0, %p71_p13 }
  0x15   : > { %p717_p5 = por %p673_p2, %p71_p13  ;;  %s61_s5 = ssub.s32 %s607_s13, %s808_s29 }
  0x16   : > { %p407_p7 = scmp.lt.s32.totalorder %s611_s14, 2  ;;  %p62_p9 = scmp.eq.s32.totalorder %s61_s5, 0 }
  0x17   : > { %s146_s6 = sand.u32 1, %s599_s11   ;;  %s367_s15 = sshll.u32 %s607_s13, 3 }
  0x18   : > { %s366_s7 = sshll.u32 %s146_s6, 6  ;;  %s154_s22 = scalar_lea.hbm %s791_s1, %s367_s15 }
  0x19   : > { %s726_s8 = scalar_select %p62_p9, %s599_s11, %s64_s30  }
  0x1a   : > { %s150_s23 = scalar_lea.vmem [#allocation5], %s366_s7  ;;  %s155_s18 = sshll.u32 %s154_s22, 4  ;;  %s156_s18 = int_to_ptr.hbm [resolvable:$true] %s155_s18 }
  0x1b   : > { %s157_s25 = sshll.u32 %s150_s23, 4  ;;  %p399_p2 = pnand %p407_p7, %p711_p3  ;;  %s158_s25 = int_to_ptr.vmem [resolvable:$true] %s157_s25 }
  0x1c   : > { %s147_s26 = scalar_lea.sflag [#allocation6], %s146_s6  ;;  %s616_s27 = smov 256  }
  0x1d   : > { %s801_s5 = smov 128   ;;  %169 = sbr.rel (%p692_p8) target bundleno = 187 (0xbb), region = 28 }
  0x1e   : > { %401 = dma.hbm_to_vmem [thread:$0]  (!%p399_p2), %s156_s18, 1024, %s158_s25, %s147_s26, %s616_s27, %s801_s5, %s615_s28  }
  0x22   : > { %578 = dma.done.wait (%p669_p1), [#allocation3], 256  }
  0x23   : > { %580 = vsyncadd (%p669_p1), [#allocation3], 4294967040  ;;  %s743_s30 = sand.u32 1, %s595_s10  }
  0x24   : > { %s370_s3 = sshll.u32 %s743_s30, 6  ;;  %s177_s6 = scalar_lea.sflag [#allocation6], %s743_s30 }
  0x25   : > { %s180_s7 = scalar_lea.vmem [#allocation5], %s370_s3 }
  0x26   : > { %582 = dma.done.wait (%p679_p4), %s177_s6, 1024  }
  0x27   : > { %584 = vsyncadd (%p679_p4), %s177_s6, 4294966272  ;;  %v213_v0 = vld [vmem:[%s180_s7 + $0x38] sm:$0xff]  ;;  %v212_v1 = vld [vmem:[%s180_s7 + $0x30] sm:$0xff]  ;;  %vm214_vm0 = vcmask 523264   ;;  %s371_s17 = sshll.u32 %s743_s30, 4  ;;  %s375_s19 = sshll.u32 %s603_s12, 3 }
  0x28   : > { %229 = vmatpush.msra.mxu0 %v213_v0  ;;  %378 = vmatpush.msra.mxu1 %v213_v0  ;;  %v211_v2 = vld [vmem:[%s180_s7 + $0x28] sm:$0xff]  ;;  %v210_v3 = vld [vmem:[%s180_s7 + $0x20] sm:$0xff]  ;;  %v209_v4 = vld [vmem:[%s180_s7 + $0x18] sm:$0xff]  ;;  %s260_s28 = scalar_lea.hbm %s792_s2, %s375_s19  ;;  %s201_s15 = scalar_lea.vmem [#allocation7], %s371_s17 }
  0x29   : > { %v208_v5 = vld [vmem:[%s180_s7 + $0x10] sm:$0xff]  ;;  %v207_v6 = vld [vmem:[%s180_s7 + $0x8] sm:$0xff]  ;;  %v206_v7 = vld [vmem:[%s180_s7] sm:$0xff]  ;;  %s261_s16 = sshll.u32 %s201_s15, 4  ;;  %s263_s21 = sshll.u32 %s260_s28, 4  ;;  %s262_s16 = int_to_ptr.vmem [resolvable:$true] %s261_s16  ;;  %s264_s21 = int_to_ptr.hbm [resolvable:$true] %s263_s21 }
  0x2a   : > { %230 = vmatpush.msra.mxu0 %v212_v1  ;;  %379 = vmatpush.msra.mxu1 %v212_v1  ;;  %v204_v8 = vld [vmem:[#allocation2] sm:$0xff]  ;;  %v205_v9 = vld [vmem:[#allocation2 + $0x8] sm:$0xff]  ;;  %s247_s22 = scalar_lea.sflag [#allocation4], %s743_s30  ;;  %s539_s23 = sshra.s32 %s264_s21, 4  ;;  %s540_s23 = int_to_ptr.hbm [resolvable:$true] %s539_s23 }
  0x2b   : > { %s541_s25 = scalar_lea.hbm %s540_s23, 16  ;;  %s545_s26 = scalar_lea.hbm %s792_s2, 32 }
  0x2c   : > { %231 = vmatpush.msra.mxu0 %v211_v2  ;;  %380 = vmatpush.msra.mxu1 %v211_v2  ;;  %p542_p1 = scmp.ne.s32.totalorder %s540_s23, %s541_s25  ;;  %p546_p10 = scmp.lt.s32.totalorder %s540_s23, %s792_s2 }
  0x2d   : > { %p547_p12 = scmp.lt.s32.totalorder %s545_s26, %s541_s25 }
  0x2e   : > { %232 = vmatpush.msra.mxu0 %v210_v3  ;;  %381 = vmatpush.msra.mxu1 %v210_v3  ;;  %p543_p4 = pnand %p542_p1, %p717_p5 }
  0x2f   : > { %p548_p13 = por %p547_p12, %p546_p10 }
  0x30   : > { %233 = vmatpush.msra.mxu0 %v209_v4  ;;  %382 = vmatpush.msra.mxu1 %v209_v4  ;;  %p544_p8 = pneg %p543_p4 }
  0x32   : > { %234 = vmatpush.msra.mxu0 %v208_v5  ;;  %383 = vmatpush.msra.mxu1 %v208_v5  ;;  %p549_p0 = pnand %p548_p13, %p544_p8 }
  0x34   : > { %235 = vmatpush.msra.mxu0 %v207_v6  ;;  %384 = vmatpush.msra.mxu1 %v207_v6 }
  0x36   : > { %236 = vmatpush.msra.mxu0 %v206_v7  ;;  %385 = vmatpush.msra.mxu1 %v206_v7 }
  0x37   : > { %372 = vmatmul.msk.f32.vlgmr.msra.gmra.mxu0 %vm214_vm0, %v204_v8  ;;  %373 = vmatmul.msk.f32.vlgmr.msra.gmra.mxu1 %vm214_vm0, %v205_v9 }
  0xb4   : > { %v238_v10 = vpop.f32.mrf.mxu0  ;;  %v241_v11 = vpop.f32.mrf.mxu1 }
  0xb5   : > { %244 = vst [vmem:[%s201_s15] sm:$0xff] %v238_v10 }
  0xb6   : > { %245 = vst [vmem:[%s201_s15 + $0x8] sm:$0xff] %v241_v11 }
  0xb7   : > { %552 = shalt.err (!%p549_p0)
}
  0xb8   : > { %s617_s30 = smov 128   ;;  %s618_s6 = smov 256  }
  0xb9   : > { %s619_s7 = smov 8  }
  0xba   : > { %392 = dma.vmem_to_hbm [thread:$0]  (%p717_p5), %s262_s16, 256, %s264_s21, %s247_s22, %s617_s30, %s618_s6, %s619_s7  }
  0xbb PF: > { %s278_s17 = sand.u32 1, %s591_s9   ;;  %p403_p3 = pnand %p365_p11, %p684_p6 }
  0xbc   : > { %s279_s19 = scalar_lea.sflag [#allocation4], %s278_s17 }
  0xbd   : > { %p404_p7 = pneg %p403_p3 }
  0xbf   : > { %586 = dma.done.wait (%p404_p7), %s279_s19, 256  }
  0xc0   : > { %588 = vsyncadd (%p404_p7), %s279_s19, 4294967040  ;;  %s19_s14 = sadd.s32 1, %s611_s14   ;;  %s802_s9 = smov %s595_s10 }
  0xc1   : > { %p16_p9 = scmp.ge.s32.totalorder %s19_s14, 4   ;;  %s803_s10 = smov %s599_s11 }
  0xc2   : > { %s804_s11 = smov %s726_s8  ;;  %s805_s12 = smov %s607_s13 }
  0xc3   : > { %s806_s13 = smov %s808_s29  ;;  %18 = sbr.rel (!%p16_p9) target bundleno = 7 (0x7), region = 79 }
  0xc8   :  { %285 = vsyncpa [#allocation3], 1 }
  0xc9   :  { %287 = vsyncpa [#allocation3 + $0x1], 1 }
  0xca   :  { %288 = vsyncpa [#allocation6], 1 }
  0xcb   :  { %290 = vsyncpa [#allocation6 + $0x1], 1 }
  0xcc   :  { %291 = vsyncpa [#allocation4], 1 }
  0xcd   :  { %293 = vsyncpa [#allocation4 + $0x1], 1 }

</bundles_post_ra>
